<compile_context>
chip_gen: v7x
topology: tpu7x:2x2x1
jax: 0.10.0
libtpu: 0.0.40
codegen_flags: <defaults>
</compile_context>

<pallas_src>
import functools

import jax
import jax.numpy as jnp
from jax import lax
from jax.experimental import pallas as pl
from jax.experimental.pallas import tpu as pltpu

LANE = 128
SUBLANE = 8


def _mse_mae_kernel(x_ref, y_ref, o_ref, *, nb, inner, tile_rows, chunk_rows,
                    valid_rows):
    c = pl.program_id(0)          # per-core / split axis
    t = pl.program_id(1)          # reduction axis
    blk = c * inner + t           # logical row-block index

    # The (8,128) output block is resident across the reduction axis -> accumulator.
    @pl.when(t == 0)
    def _():
        o_ref[...] = jnp.zeros_like(o_ref)

    n_chunks = tile_rows // chunk_rows

    def chunk_sum(i, masked):
        off = pl.multiple_of(i * chunk_rows, chunk_rows)
        d = (x_ref[pl.ds(off, chunk_rows), :].astype(jnp.float32)
             - y_ref[pl.ds(off, chunk_rows), :].astype(jnp.float32))
        v = d * d + jnp.abs(d)                       # fused MSE + MAE contribution
        if masked:
            row0 = blk * tile_rows + off
            rid = row0 + lax.broadcasted_iota(jnp.int32, (chunk_rows, LANE), 0)
            v = jnp.where(rid < valid_rows, v, 0.0)
        # Keep the partial sum vector-shaped (pure VPU adds, no cross-lane work).
        return v.reshape(chunk_rows // SUBLANE, SUBLANE, LANE).sum(axis=0)

    def accumulate(masked):
        o_ref[...] += lax.fori_loop(
            0, n_chunks, lambda i, a: a + chunk_sum(i, masked),
            jnp.zeros((SUBLANE, LANE), jnp.float32), unroll=True)

    # Skip duplicated (clamped) blocks produced by a ragged split of nb.
    @pl.when(blk < nb)
    def _():
        if valid_rows % tile_rows == 0:
            accumulate(False)                 # every block full: never mask
        else:
            is_edge = blk == nb - 1           # only the last block is partial

            @pl.when(jnp.logical_not(is_edge))
            def _():
                accumulate(False)

            @pl.when(is_edge)
            def _():
                accumulate(True)


def _default_splits():
    # 2 TensorCores per chip only on v7x; elsewhere a split is just a serial loop.
    try:
        kind = jax.devices()[0].device_kind.lower()
    except Exception:
        return 1
    return 2 if "7" in kind else 1


def mse_mae(x, y, *, tile_rows=None, num_splits=None):
    """MSE(x, y) + MAE(x, y); the heavy reduction runs in a Pallas TPU kernel."""
    assert x.shape == y.shape, "mse_mae expects matching shapes"
    n = int(x.size)
    if n == 0:
        return jnp.float32(0.0)

    # Keep 16-bit inputs 16-bit (halves HBM read traffic); upcast inside kernel.
    def _norm(a):
        if a.dtype in (jnp.float32, jnp.bfloat16, jnp.float16):
            return a
        return a.astype(jnp.float32)

    xf = jnp.ravel(_norm(x))
    yf = jnp.ravel(_norm(y))

    bulk = (n // LANE) * LANE      # lane-aligned bulk handled by the kernel
    rows = bulk // LANE

    if rows < 2 * SUBLANE:
        # Tiny input: not worth a kernel launch.
        df = xf.astype(jnp.float32) - yf.astype(jnp.float32)
        return jnp.sum(df * df + jnp.abs(df)) / jnp.float32(n)

    # Ragged (<128-element) remainder handled in plain JAX (tiny copy only).
    tail_sum = jnp.float32(0.0)
    if bulk != n:
        # TODO(synk): for n % 128 != 0 the bulk slice below still copies the
        # bulk once; avoiding it needs a manual-DMA 1-D path.
        xt = xf[bulk:].astype(jnp.float32)
        yt = yf[bulk:].astype(jnp.float32)
        dt = xt - yt
        tail_sum = jnp.sum(dt * dt + jnp.abs(dt))
        xf = xf[:bulk]
        yf = yf[:bulk]

    x2 = xf.reshape(rows, LANE)    # free bitcast when n % 128 == 0 (common case)
    y2 = yf.reshape(rows, LANE)

    if tile_rows is None:
        is_f32 = (x2.dtype == jnp.float32) or (y2.dtype == jnp.float32)
        tile_rows = 8192 if is_f32 else 16384   # ~4 MiB per input block

    # Largest power-of-two block height (>=16 rows) not exceeding the data.
    eff = 16
    while eff * 2 <= min(int(tile_rows), rows):
        eff *= 2
    chunk = min(512, eff)          # both powers of two -> chunk divides eff

    nb = pl.cdiv(rows, eff)
    splits = _default_splits() if num_splits is None else int(num_splits)
    splits = max(1, min(splits, nb))
    inner = pl.cdiv(nb, splits)

    def in_map(c, t):
        # Clamp so a ragged last split never indexes out of range; the in-kernel
        # blk < nb guard skips the duplicated block's compute.
        return (jnp.minimum(c * inner + t, nb - 1), 0)

    kernel = functools.partial(
        _mse_mae_kernel, nb=nb, inner=inner, tile_rows=eff, chunk_rows=chunk,
        valid_rows=rows)

    bytes_in = rows * LANE * (x2.dtype.itemsize + y2.dtype.itemsize)
    cost = pl.CostEstimate(
        flops=5 * rows * LANE, transcendentals=0,
        bytes_accessed=bytes_in + splits * SUBLANE * LANE * 4)

    lead_sem = pltpu.CORE_PARALLEL if splits > 1 else pltpu.ARBITRARY

    out = pl.pallas_call(
        kernel,
        out_shape=jax.ShapeDtypeStruct((splits * SUBLANE, LANE), jnp.float32),
        grid_spec=pltpu.PrefetchScalarGridSpec(
            num_scalar_prefetch=0,
            grid=(splits, inner),
            in_specs=[
                pl.BlockSpec((eff, LANE), in_map),
                pl.BlockSpec((eff, LANE), in_map),
            ],
            out_specs=pl.BlockSpec((SUBLANE, LANE), lambda c, t: (c, 0)),
        ),
        compiler_params=pltpu.CompilerParams(
            dimension_semantics=(lead_sem, pltpu.ARBITRARY),
            vmem_limit_bytes=32 * 1024 * 1024,
        ),
        cost_estimate=cost,
    )(x2, y2)

    # Tiny final reduce (splits*8*128 f32) + ragged tail, divided by the true n.
    return (jnp.sum(out) + tail_sum) / jnp.float32(n)


if __name__ == "__main__":
    key = jax.random.PRNGKey(0)
    kx, ky = jax.random.split(key)
    # small NCHW-like shapes consistent with an image reconstruction loss
    x = jax.random.normal(kx, (2, 4, 16, 16), dtype=jnp.float32)
    y = jax.random.normal(ky, (2, 4, 16, 16), dtype=jnp.float32)

    loss = mse_mae(x, y)
    jax.block_until_ready(loss)
    d = x - y
    ref = jnp.mean(d * d) + jnp.mean(jnp.abs(d))
    assert jnp.allclose(loss, ref, rtol=1e-5, atol=1e-6), (loss, ref)

    # Larger, tile-unaligned shape: exercises the partial edge-block mask path
    # (no wrapper-side pad/copy: 320000 elems is lane-aligned but not tile-aligned).
    kx2, ky2 = jax.random.split(ky)
    xb = jax.random.normal(kx2, (2, 4, 200, 200), dtype=jnp.float32)
    yb = jax.random.normal(ky2, (2, 4, 200, 200), dtype=jnp.float32)
    loss_b = mse_mae(xb, yb)
    jax.block_until_ready(loss_b)
    db = xb - yb
    ref_b = jnp.mean(db * db) + jnp.mean(jnp.abs(db))
    assert jnp.allclose(loss_b, ref_b, rtol=1e-5, atol=1e-6), (loss_b, ref_b)

    print("KERNEL_OK")
</pallas_src>

<mosaic_0001>
module attributes {stable_mosaic.version = 11 : i64} {
  func.func @_mse_mae_kernel(%arg0: i32, %arg1: i32, %arg2: memref<16x128xf32, #tpu.memory_space<vmem>>, %arg3: memref<16x128xf32, #tpu.memory_space<vmem>>, %arg4: memref<8x128xf32, #tpu.memory_space<vmem>>) attributes {dimension_semantics = [#tpu.dimension_semantics<arbitrary>, #tpu.dimension_semantics<arbitrary>], iteration_bounds = array<i64: 1, 1>, scalar_prefetch = 0 : i64, scratch_operands = 0 : i64, tpu.core_type = #tpu.core_type<tc>, window_params = [{transform_indices = @transform_0, window_bounds = array<i64: 16, 128>}, {transform_indices = @transform_1, window_bounds = array<i64: 16, 128>}, {transform_indices = @transform_2, window_bounds = array<i64: 8, 128>}]} {
    %c1_i32 = arith.constant 1 : i32
    %0 = arith.muli %arg0, %c1_i32 : i32
    %1 = arith.addi %0, %arg1 : i32
    %c0_i32 = arith.constant 0 : i32
    %2 = arith.cmpi eq, %arg1, %c0_i32 : i32
    %3 = arith.extui %2 : i1 to i32
    %c0_i32_0 = arith.constant 0 : i32
    %4 = arith.cmpi ne, %3, %c0_i32_0 : i32
    scf.if %4 {
      %cst = arith.constant 0.000000e+00 : f32
      %8 = vector.broadcast %cst : f32 to vector<8x128xf32>
      %c0 = arith.constant 0 : index
      %c0_3 = arith.constant 0 : index
      %9 = vector.load %arg4[%c0, %c0_3] : memref<8x128xf32, #tpu.memory_space<vmem>>, vector<8x128xf32>
      tpu.vector_store %arg4[%c0, %c0_3], %8 {strides = array<i32>} : memref<8x128xf32, #tpu.memory_space<vmem>>, vector<8x128xf32>,
    } else {
    }
    %c1_i32_1 = arith.constant 1 : i32
    %5 = arith.cmpi slt, %1, %c1_i32_1 : i32
    %6 = arith.extui %5 : i1 to i32
    %c0_i32_2 = arith.constant 0 : i32
    %7 = arith.cmpi ne, %6, %c0_i32_2 : i32
    scf.if %7 {
      %c0 = arith.constant 0 : index
      %c0_3 = arith.constant 0 : index
      %8 = vector.load %arg4[%c0, %c0_3] : memref<8x128xf32, #tpu.memory_space<vmem>>, vector<8x128xf32>
      %cst = arith.constant 0.000000e+00 : f32
      %9 = vector.broadcast %cst : f32 to vector<8x128xf32>
      %c0_i32_4 = arith.constant 0 : i32
      %c16_i32 = arith.constant 16 : i32
      %10 = arith.muli %c0_i32_4, %c16_i32 : i32
      %11 = tpu.assume_multiple %10, 16 : i32
      %12 = arith.index_cast %11 : i32 to index
      %c0_5 = arith.constant 0 : index
      %13 = vector.load %arg2[%12, %c0_5] : memref<16x128xf32, #tpu.memory_space<vmem>>, vector<16x128xf32>
      %14 = arith.index_cast %11 : i32 to index
      %c0_6 = arith.constant 0 : index
      %15 = vector.load %arg3[%14, %c0_6] : memref<16x128xf32, #tpu.memory_space<vmem>>, vector<16x128xf32>
      %16 = arith.subf %13, %15 : vector<16x128xf32>
      %17 = arith.mulf %16, %16 : vector<16x128xf32>
      %18 = math.absf %16 : vector<16x128xf32>
      %19 = arith.addf %17, %18 : vector<16x128xf32>
      %20 = vector.shape_cast %19 : vector<16x128xf32> to vector<2x8x128xf32>
      %cst_7 = arith.constant dense<0.000000e+00> : vector<8x128xf32>
      %21 = vector.multi_reduction <add>, %20, %cst_7 [0] : vector<2x8x128xf32> to vector<8x128xf32>
      %22 = arith.addf %9, %21 : vector<8x128xf32>
      %c1_i32_8 = arith.constant 1 : i32
      %23 = arith.addf %8, %22 : vector<8x128xf32>
      %c0_9 = arith.constant 0 : index
      %c0_10 = arith.constant 0 : index
      %24 = vector.load %arg4[%c0_9, %c0_10] : memref<8x128xf32, #tpu.memory_space<vmem>>, vector<8x128xf32>
      tpu.vector_store %arg4[%c0_9, %c0_10], %23 {strides = array<i32>} : memref<8x128xf32, #tpu.memory_space<vmem>>, vector<8x128xf32>,
    } else {
    }
    return
  }
  func.func @transform_0(%arg0: i32, %arg1: i32) -> (i32, i32) {
    %c1_i32 = arith.constant 1 : i32
    %0 = arith.muli %arg0, %c1_i32 : i32
    %1 = arith.addi %0, %arg1 : i32
    %c0_i32 = arith.constant 0 : i32
    %2 = arith.minsi %1, %c0_i32 : i32
    %c0_i32_0 = arith.constant 0 : i32
    %c0_i32_1 = arith.constant 0 : i32
    return %2, %c0_i32_0 : i32, i32
  }
  func.func @transform_1(%arg0: i32, %arg1: i32) -> (i32, i32) {
    %c1_i32 = arith.constant 1 : i32
    %0 = arith.muli %arg0, %c1_i32 : i32
    %1 = arith.addi %0, %arg1 : i32
    %c0_i32 = arith.constant 0 : i32
    %2 = arith.minsi %1, %c0_i32 : i32
    %c0_i32_0 = arith.constant 0 : i32
    %c0_i32_1 = arith.constant 0 : i32
    return %2, %c0_i32_0 : i32, i32
  }
  func.func @transform_2(%arg0: i32, %arg1: i32) -> (i32, i32) {
    %c0_i32 = arith.constant 0 : i32
    %c0_i32_0 = arith.constant 0 : i32
    return %arg0, %c0_i32 : i32, i32
  }
}

</mosaic_0001>

<bundles_post_ra>
// kernel: tpu_custom_call.1
= control target key start
LH: loop header
LB: loop body
LE: loop exit
PB: predicated region body
PF: predicated region fallthrough
CT: control target
= control target key end

     0   :  { %7 = vsyncpa [#allocation3], 0  ;;  %s241_s0 = inlined_call_operand.hbm [shape: f32[16,128], index: 0, kind: input, shape index: {}]   ;;  %s242_s1 = inlined_call_operand.hbm [shape: f32[16,128], index: 1, kind: input, shape index: {}]   ;;  %s243_s2 = inlined_call_operand.hbm [shape: f32[8,128], index: 2, kind: output, shape index: {}]  }
   0x1   :  { %8 = vsyncpa [#allocation6], 0 }
   0x2   :  { %9 = vsyncpa [#allocation4], 0  ;;  %s185_s9 = smov [#allocation2]   ;;  %s113_s13 = scalar_lea.hbm %s241_s0, 256 }
   0x3   :  { %s21_s10 = sshll.u32 %s185_s9, 4  ;;  %p114_p0 = scmp.ne.s32.totalorder %s241_s0, %s113_s13  ;;  %s22_s10 = int_to_ptr.vmem [resolvable:$true] %s21_s10 }
   0x4   :  { %p117_p1 = scmp.lt.u32.totalorder %s113_s13, %s241_s0 }
   0x6   :  { %p119_p2 = pnand %p117_p1, %p114_p0 }
   0x8   :  { %122 = shalt.err (!%p119_p2)
}
   0x9   :  { %s123_s18 = scalar_lea.vmem %s22_s10, 256  ;;  %p128_p4 = scmp.lt.s32.totalorder %s22_s10, %s22_s10 }
   0xa   :  { %p124_p3 = scmp.ne.s32.totalorder %s22_s10, %s123_s18  ;;  %p129_p5 = scmp.lt.s32.totalorder %s123_s18, %s123_s18 }
   0xc   :  { %p130_p6 = por %p129_p5, %p128_p4 }
   0xe   :  { %p131_p7 = pnand %p130_p6, %p124_p3 }
  0x10   :  { %134 = shalt.err (!%p131_p7)
}
  0x11   :  { %s186_s19 = smov 128   ;;  %s187_s20 = smov 8  }
  0x12   :  { %27 = dma.hbm_to_vmem [thread:$0]  %s241_s0, 256, %s22_s10, [#allocation3], %s186_s19, %s186_s19, %s187_s20  }
  0x13   :  { %s188_s23 = smov [#allocation5]   ;;  %s135_s27 = scalar_lea.hbm %s242_s1, 256 }
  0x14   :  { %s39_s24 = sshll.u32 %s188_s23, 4  ;;  %p136_p8 = scmp.ne.s32.totalorder %s242_s1, %s135_s27  ;;  %s40_s24 = int_to_ptr.vmem [resolvable:$true] %s39_s24 }
  0x15   :  { %p139_p9 = scmp.lt.u32.totalorder %s135_s27, %s242_s1 }
  0x17   :  { %p141_p10 = pnand %p139_p9, %p136_p8 }
  0x19   :  { %144 = shalt.err (!%p141_p10)
}
  0x1a   :  { %s145_s4 = scalar_lea.vmem %s40_s24, 256  ;;  %p150_p12 = scmp.lt.s32.totalorder %s40_s24, %s40_s24 }
  0x1b   :  { %p146_p11 = scmp.ne.s32.totalorder %s40_s24, %s145_s4  ;;  %p151_p13 = scmp.lt.s32.totalorder %s145_s4, %s145_s4 }
  0x1d   :  { %p152_p0 = por %p151_p13, %p150_p12 }
  0x1f   :  { %p153_p1 = pnand %p152_p0, %p146_p11 }
  0x21   :  { %156 = shalt.err (!%p153_p1)
}
  0x22   :  { %45 = dma.hbm_to_vmem [thread:$0]  %s242_s1, 256, %s40_s24, [#allocation6], %s186_s19, %s186_s19, %s187_s20  }
  0x23   :  { %179 = dma.done.wait [#allocation3], 256  }
  0x24   :  { %180 = vsyncadd [#allocation3], 4294967040 }
  0x25   :  { %181 = dma.done.wait [#allocation6], 256  }
  0x26   :  { %182 = vsyncadd [#allocation6], 4294967040  ;;  %v71_v0 = vld [vmem:[#allocation2] sm:$0xff]  ;;  %v72_v1 = vld [vmem:[#allocation2 + $0x8] sm:$0xff]  ;;  %s189_s6 = smov [#allocation7]  }
  0x27   :  { %v73_v2 = vld [vmem:[#allocation5] sm:$0xff]  ;;  %v74_v3 = vld [vmem:[#allocation5 + $0x8] sm:$0xff]  ;;  %s93_s7 = sshll.u32 %s189_s6, 4  ;;  %s94_s7 = int_to_ptr.vmem [resolvable:$true] %s93_s7 }
  0x28   :  { %v75_v4 = vsub.f32 %v71_v0, %v73_v2  ;;  %v76_v5 = vsub.f32 %v72_v1, %v74_v3  ;;  %s157_s1 = scalar_lea.vmem %s94_s7, 128  ;;  %p162_p3 = scmp.lt.s32.totalorder %s94_s7, %s94_s7 }
  0x29   :  { %p158_p2 = scmp.ne.s32.totalorder %s94_s7, %s157_s1  ;;  %p163_p4 = scmp.lt.s32.totalorder %s157_s1, %s157_s1 }
  0x2a   :  { %v77_v6 = vmul.f32 %v75_v4, %v75_v4  ;;  %v79_v7 = vand.u32 2147483647, %v75_v4  ;;  %v78_v8 = vmul.f32 %v76_v5, %v76_v5  ;;  %v80_v9 = vand.u32 2147483647, %v76_v5 }
  0x2b   :  { %p164_p5 = por %p163_p4, %p162_p3 }
  0x2c   :  { %v81_v10 = vadd.f32 %v79_v7, %v77_v6  ;;  %v82_v11 = vadd.f32 %v80_v9, %v78_v8 }
  0x2d   :  { %p165_p6 = pnand %p164_p5, %p158_p2 }
  0x2e   :  { %v83_v12 = vadd.f32 %v82_v11, %v81_v10 }
  0x30   :  { %86 = vst [vmem:[#allocation7] sm:$0xff] %v83_v12 }
  0x31   :  { %168 = shalt.err (!%p165_p6)
}
  0x32   :  { %s169_s10 = scalar_lea.hbm %s243_s2, 128 }
  0x33   :  { %p170_p7 = scmp.ne.s32.totalorder %s243_s2, %s169_s10  ;;  %p173_p8 = scmp.lt.u32.totalorder %s169_s10, %s243_s2 }
  0x35   :  { %p175_p9 = pnand %p173_p8, %p170_p7 }
  0x37   :  { %178 = shalt.err (!%p175_p9)
}
  0x38   :  { %96 = dma.vmem_to_hbm [thread:$0]  %s94_s7, 128, %s243_s2, [#allocation4]  }
  0x39   :  { %183 = dma.done.wait [#allocation4], 128  }
  0x3a   :  { %184 = vsyncadd [#allocation4], 4294967168 }
  0x3b   :  { %100 = vsyncpa [#allocation3], 1 }
  0x3c   :  { %101 = vsyncpa [#allocation6], 1 }
  0x3d   :  { %102 = vsyncpa [#allocation4], 1 }

</bundles_post_ra>
